<compile_context>
chip_gen: v7x
topology: tpu7x:2x2x1
jax: 0.10.0
libtpu: 0.0.40
codegen_flags: <defaults>
</compile_context>

<pallas_src>
import functools

import jax
import jax.numpy as jnp
from jax import lax
from jax.experimental import pallas as pl
from jax.experimental.pallas import tpu as pltpu

# ----- config (mirrors the PyTorch Config fields used by Head) -----
N_EMBD = 32          # config.n_embd
N_HEAD = 4           # config.n_head
HEAD_SIZE = N_EMBD // N_HEAD
BLOCK_SIZE = 8       # config.block_size (== T here)
DROPOUT = 0.0        # config.dropout; eval-mode / p=0 -> identity
# TODO(synk): dropout with p>0 in train mode would need pltpu.prng_seed/prng_random_bits; identity here.


def _attn_kernel(x_ref, wqkv_ref, out_ref, wei_ref, *, n_head):
    """Fused QKV projection + causal-softmax attention for `n_head` heads.

    x_ref:    (B, T, C)            f32 or bf16
    wqkv_ref: (C, 3*n_head*H)      columns = [q_0..q_{NH-1} | k_0.. | v_0..]
    out_ref:  (B, T, n_head*H)     f32
    wei_ref:  (B, T, T) if n_head == 1 else (B, n_head, T, T)
    """
    x = x_ref[...]
    w = wqkv_ref[...]
    B, T, C = x.shape
    NH = n_head
    H = out_ref.shape[-1] // NH

    # One wide MXU contraction produces q/k/v for every head at once
    # (3*NH*H output lanes instead of 3*NH tiny H-lane matmuls); acc in f32.
    qkv = lax.dot_general(x, w, (((2,), (0,)), ((), ())),
                          preferred_element_type=jnp.float32)       # (B, T, 3*NH*H)

    # Causal mask (keep col <= row); a large finite negative is robust vs -inf
    # and still yields exactly-zero probabilities after the softmax.
    row = lax.broadcasted_iota(jnp.int32, (T, T), 0)
    col = lax.broadcasted_iota(jnp.int32, (T, T), 1)
    causal = (col <= row)[None, :, :]
    scale = H ** -0.5

    # Static (trace-time) loop over heads: the per-head 8x8x8 score / value
    # matmuls are latency-bound regardless; results go out via static slice
    # stores (no lane-axis concatenate, no padded slab).
    for h in range(NH):
        q = qkv[:, :, h * H:(h + 1) * H]                     # (B, T, H)
        k = qkv[:, :, (NH + h) * H:(NH + h + 1) * H]         # (B, T, H)
        v = qkv[:, :, (2 * NH + h) * H:(2 * NH + h + 1) * H]  # (B, T, H)

        s = jnp.einsum('bqh,bkh->bqk', q, k,
                       preferred_element_type=jnp.float32) * scale   # (B, T, T)
        s = jnp.where(causal, s, -1e30)

        # Numerically-stable softmax with EXACT normalization: `wei` is a
        # user-visible output, so no approx reciprocal (cost negligible here).
        m = jnp.max(s, axis=-1, keepdims=True)
        p = jnp.exp(s - m)
        p = p / jnp.sum(p, axis=-1, keepdims=True)
        # dropout(p) with p == 0.0 (eval mode) is the identity.

        o = jnp.einsum('bqk,bkh->bqh', p, v,
                       preferred_element_type=jnp.float32)            # (B, T, H)

        out_ref[:, :, h * H:(h + 1) * H] = o.astype(out_ref.dtype)
        if NH == 1:
            wei_ref[...] = p.astype(wei_ref.dtype)
        else:
            wei_ref[:, h, :, :] = p.astype(wei_ref.dtype)


def fuse_qkv_weights(w_keys, w_queries, w_values):
    """Fold per-head PyTorch nn.Linear weights (each (H, C), no bias) into one
    (C, 3*NH*H) right-hand side with columns [q_0..q_{NH-1} | k_0.. | v_0..].

    This is a per-model CONSTANT: call it once at parameter-init time and reuse
    the result, so the transposes/concat never sit on the per-forward path.
    """
    cols = ([w.T for w in w_queries]
            + [w.T for w in w_keys]
            + [w.T for w in w_values])
    return jnp.concatenate(cols, axis=1)


def attention_forward(x, w_qkv, n_head):
    """x: (B, T, C); w_qkv: (C, 3*n_head*H) pre-fused (see fuse_qkv_weights).

    Returns (out, wei) with out: (B, T, n_head*H) and
    wei: (B, T, T) for n_head == 1, else (B, n_head, T, T).
    x / w_qkv may be f32 or bf16 (bf16 halves input DMA bytes; the post-matmul
    softmax math stays in f32 inside the kernel).
    """
    B, T, C = x.shape
    H = w_qkv.shape[1] // (3 * n_head)
    wei_shape = (B, T, T) if n_head == 1 else (B, n_head, T, T)
    # Single-step call (no grid): the whole problem fits one VMEM tile.
    # TODO(synk): on v7x (2 TensorCores), once B*n_head work grows, add a leading
    # (batch x head) grid axis with dimension_semantics=("parallel", ...).
    return pl.pallas_call(
        functools.partial(_attn_kernel, n_head=n_head),
        out_shape=(jax.ShapeDtypeStruct((B, T, n_head * H), jnp.float32),
                   jax.ShapeDtypeStruct(wei_shape, jnp.float32)),
        in_specs=[
            pl.BlockSpec(memory_space=pltpu.MemorySpace.VMEM),
            pl.BlockSpec(memory_space=pltpu.MemorySpace.VMEM),
        ],
        out_specs=(
            pl.BlockSpec(memory_space=pltpu.MemorySpace.VMEM),
            pl.BlockSpec(memory_space=pltpu.MemorySpace.VMEM),
        ),
    )(x, w_qkv)


def head_forward(x, w_qkv_head):
    """Single-head forward with the exact semantics of the PyTorch `Head`."""
    return attention_forward(x, w_qkv_head, n_head=1)


def _reference(x, w_key, w_query, w_value):
    k = x @ w_key.T
    q = x @ w_query.T
    wei = (q @ jnp.swapaxes(k, -2, -1)) * (k.shape[-1] ** -0.5)
    T = x.shape[1]
    tril = jnp.tril(jnp.ones((T, T)))
    wei = jnp.where(tril == 0, -jnp.inf, wei)
    wei = jax.nn.softmax(wei, axis=-1)
    v = x @ w_value.T
    return wei @ v, wei


if __name__ == "__main__":
    key = jax.random.PRNGKey(0)
    kx, kk, kq, kv = jax.random.split(key, 4)

    B, T, C, H = 2, BLOCK_SIZE, N_EMBD, HEAD_SIZE
    x = jax.random.normal(kx, (B, T, C), dtype=jnp.float32)
    # deterministic "Linear" weights, PyTorch layout (out_features, in_features)
    bound = 1.0 / (C ** 0.5)
    w_key_ = jax.random.uniform(kk, (H, C), jnp.float32, -bound, bound)
    w_query = jax.random.uniform(kq, (H, C), jnp.float32, -bound, bound)
    w_value = jax.random.uniform(kv, (H, C), jnp.float32, -bound, bound)

    # ---- single Head (the PyTorch module): fuse the weights ONCE at init ----
    w_qkv_head = fuse_qkv_weights([w_key_], [w_query], [w_value])    # (C, 3H)
    out, wei = head_forward(x, w_qkv_head)
    jax.block_until_ready((out, wei))

    out_ref, wei_ref = _reference(x, w_key_, w_query, w_value)
    assert jnp.allclose(out, out_ref, atol=1e-4, rtol=1e-4), \
        float(jnp.max(jnp.abs(out - out_ref)))
    assert jnp.allclose(wei, wei_ref, atol=1e-4, rtol=1e-4), \
        float(jnp.max(jnp.abs(wei - wei_ref)))

    # ---- fused multi-head variant: all N_HEAD heads in ONE pallas_call ----
    hkeys = jax.random.split(jax.random.PRNGKey(1), 3 * N_HEAD)
    w_keys = [jax.random.uniform(hkeys[3 * i + 0], (H, C), jnp.float32, -bound, bound)
              for i in range(N_HEAD)]
    w_queries = [jax.random.uniform(hkeys[3 * i + 1], (H, C), jnp.float32, -bound, bound)
                 for i in range(N_HEAD)]
    w_values = [jax.random.uniform(hkeys[3 * i + 2], (H, C), jnp.float32, -bound, bound)
                for i in range(N_HEAD)]
    w_qkv_mha = fuse_qkv_weights(w_keys, w_queries, w_values)        # (C, 3*NH*H)
    out_mha, wei_mha = attention_forward(x, w_qkv_mha, n_head=N_HEAD)
    jax.block_until_ready((out_mha, wei_mha))

    for h in range(N_HEAD):
        o_r, w_r = _reference(x, w_keys[h], w_queries[h], w_values[h])
        assert jnp.allclose(out_mha[:, :, h * H:(h + 1) * H], o_r, atol=1e-4, rtol=1e-4)
        assert jnp.allclose(wei_mha[:, h], w_r, atol=1e-4, rtol=1e-4)

    print("KERNEL_OK")
</pallas_src>

<mosaic_0001>
module attributes {stable_mosaic.version = 11 : i64} {
  func.func @_attn_kernel(%arg0: memref<2x8x32xf32, #tpu.memory_space<vmem>>, %arg1: memref<32x24xf32, #tpu.memory_space<vmem>>, %arg2: memref<2x8x8xf32, #tpu.memory_space<vmem>>, %arg3: memref<2x8x8xf32, #tpu.memory_space<vmem>>) attributes {dimension_semantics = [], scalar_prefetch = 0 : i64, scratch_operands = 0 : i64, tpu.core_type = #tpu.core_type<tc>} {
    %c0 = arith.constant 0 : index
    %c0_0 = arith.constant 0 : index
    %c0_1 = arith.constant 0 : index
    %0 = vector.load %arg0[%c0, %c0_0, %c0_1] : memref<2x8x32xf32, #tpu.memory_space<vmem>>, vector<2x8x32xf32>
    %c0_2 = arith.constant 0 : index
    %c0_3 = arith.constant 0 : index
    %1 = vector.load %arg1[%c0_2, %c0_3] : memref<32x24xf32, #tpu.memory_space<vmem>>, vector<32x24xf32>
    %cst = arith.constant dense<0.000000e+00> : vector<2x8x24xf32>
    %2 = tpu.matmul %0, %1, %cst {dimension_numbers = #tpu.dot_dimension_numbers<[2], [0], [0, 1], [1], [0, 0, 0, 1, 1, 1], [], []>} : vector<2x8x32xf32>, vector<32x24xf32>, vector<2x8x24xf32> -> vector<2x8x24xf32>
    %3 = tpu.iota {dimensions = array<i32: 0>} : vector<8x8xi32>
    %4 = tpu.iota {dimensions = array<i32: 1>} : vector<8x8xi32>
    %5 = arith.cmpi sle, %4, %3 : vector<8x8xi32>
    %6 = vector.shape_cast %5 : vector<8x8xi1> to vector<1x8x8xi1>
    %7 = vector.extract_strided_slice %2 {offsets = [0, 0, 0], sizes = [2, 8, 8], strides = [1, 1, 1]} : vector<2x8x24xf32> to vector<2x8x8xf32>
    %8 = vector.extract_strided_slice %2 {offsets = [0, 0, 8], sizes = [2, 8, 8], strides = [1, 1, 1]} : vector<2x8x24xf32> to vector<2x8x8xf32>
    %9 = vector.extract_strided_slice %2 {offsets = [0, 0, 16], sizes = [2, 8, 8], strides = [1, 1, 1]} : vector<2x8x24xf32> to vector<2x8x8xf32>
    "tpu.trace_start"() <{level = 10 : i32, message = "bqh,bkh->bqk"}> : () -> ()
    %cst_4 = arith.constant dense<0.000000e+00> : vector<2x8x8xf32>
    %10 = tpu.matmul %7, %8, %cst_4 {dimension_numbers = #tpu.dot_dimension_numbers<[2], [2], [1], [1], [0, 0, 0, 1, 1, 1], [0], [0]>} : vector<2x8x8xf32>, vector<2x8x8xf32>, vector<2x8x8xf32> -> vector<2x8x8xf32>
    "tpu.trace_stop"() : () -> ()
    %cst_5 = arith.constant 0.353553385 : f32
    %11 = vector.broadcast %cst_5 : f32 to vector<2x8x8xf32>
    %12 = arith.mulf %10, %11 : vector<2x8x8xf32>
    %cst_6 = arith.constant -1.000000e+30 : f32
    %13 = vector.shape_cast %6 : vector<1x8x8xi1> to vector<1x8x8xi1>
    %14 = vector.broadcast %13 : vector<1x8x8xi1> to vector<2x8x8xi1>
    %15 = vector.broadcast %cst_6 : f32 to vector<2x8x8xf32>
    %16 = arith.select %14, %12, %15 : vector<2x8x8xi1>, vector<2x8x8xf32>
    %cst_7 = arith.constant dense<0xFF800000> : vector<2x8xf32>
    %17 = vector.multi_reduction <maximumf>, %16, %cst_7 [2] : vector<2x8x8xf32> to vector<2x8xf32>
    %18 = vector.shape_cast %17 : vector<2x8xf32> to vector<2x8x1xf32>
    %19 = vector.broadcast %18 : vector<2x8x1xf32> to vector<2x8x8xf32>
    %20 = arith.subf %16, %19 : vector<2x8x8xf32>
    %21 = math.exp %20 : vector<2x8x8xf32>
    %cst_8 = arith.constant dense<0.000000e+00> : vector<2x8xf32>
    %22 = vector.multi_reduction <add>, %21, %cst_8 [2] : vector<2x8x8xf32> to vector<2x8xf32>
    %23 = vector.shape_cast %22 : vector<2x8xf32> to vector<2x8x1xf32>
    %24 = vector.broadcast %23 : vector<2x8x1xf32> to vector<2x8x8xf32>
    %25 = arith.divf %21, %24 : vector<2x8x8xf32>
    "tpu.trace_start"() <{level = 10 : i32, message = "bqk,bkh->bqh"}> : () -> ()
    %cst_9 = arith.constant dense<0.000000e+00> : vector<2x8x8xf32>
    %26 = tpu.matmul %25, %9, %cst_9 {dimension_numbers = #tpu.dot_dimension_numbers<[2], [1], [1], [2], [0, 0, 0, 1, 1, 2], [0], [0]>} : vector<2x8x8xf32>, vector<2x8x8xf32>, vector<2x8x8xf32> -> vector<2x8x8xf32>
    "tpu.trace_stop"() : () -> ()
    %c0_10 = arith.constant 0 : index
    %c0_11 = arith.constant 0 : index
    %c0_12 = arith.constant 0 : index
    %27 = vector.load %arg2[%c0_10, %c0_11, %c0_12] : memref<2x8x8xf32, #tpu.memory_space<vmem>>, vector<2x8x8xf32>
    tpu.vector_store %arg2[%c0_10, %c0_11, %c0_12], %26 {strides = array<i32>} : memref<2x8x8xf32, #tpu.memory_space<vmem>>, vector<2x8x8xf32>,
    %c0_13 = arith.constant 0 : index
    %c0_14 = arith.constant 0 : index
    %c0_15 = arith.constant 0 : index
    %28 = vector.load %arg3[%c0_13, %c0_14, %c0_15] : memref<2x8x8xf32, #tpu.memory_space<vmem>>, vector<2x8x8xf32>
    tpu.vector_store %arg3[%c0_13, %c0_14, %c0_15], %25 {strides = array<i32>} : memref<2x8x8xf32, #tpu.memory_space<vmem>>, vector<2x8x8xf32>,
    return
  }
}

</mosaic_0001>

<bundles_post_ra>
// kernel: tpu_custom_call.1
= control target key start
LH: loop header
LB: loop body
LE: loop exit
PB: predicated region body
PF: predicated region fallthrough
CT: control target
= control target key end

     0   :  { %9 = vsyncpa [#allocation3], 0  ;;  %vm21_vm0 = vcmask 261120   ;;  %s692_s0 = inlined_call_operand.vmem [shape: f32[2,8,32], index: 0, kind: input, shape index: {}]   ;;  %s693_s1 = inlined_call_operand.vmem [shape: f32[32,24], index: 1, kind: input, shape index: {}]   ;;  %s694_s2 = inlined_call_operand.hbm [shape: f32[2,8,8], index: 2, kind: output, shape index: {0}]   ;;  %s695_s3 = inlined_call_operand.hbm [shape: f32[2,8,8], index: 3, kind: output, shape index: {1}]  }
   0x1   :  { %v17_v0 = vld [vmem:[%s693_s1] sm:$0xff]  ;;  %v18_v1 = vld [vmem:[%s693_s1 + $0x8] sm:$0xff]  ;;  %v19_v2 = vld [vmem:[%s693_s1 + $0x10] sm:$0xff] }
   0x2   :  { %v532_v3 = vpack.c.bf16 %v18_v1, %v17_v0  ;;  %v20_v4 = vld [vmem:[%s693_s1 + $0x18] sm:$0xff]  ;;  %v15_v5 = vld [vmem:[%s692_s0] sm:$0xff] }
   0x3   :  { %v536_v6 = vpack.c.bf16 %v20_v4, %v19_v2  ;;  %509 = vmatprep.mubr.msk.f32.mxu0 %vm21_vm0, %v15_v5 }
   0x4   :  { %10 = vsyncpa [#allocation5], 0  ;;  %533 = vmatprep.subr.bf16.mxu0 %v532_v3  ;;  %v16_v7 = vld [vmem:[%s692_s0 + $0x8] sm:$0xff]  ;;  %v604_v8 = vmov 0.0   ;;  %vm605_vm1 = vmmov 0   ;;  %s606_s1 = smov 120   ;;  %v103_v13 = vlaneseq }
   0x5   :  { %535 = vmatpush3.bf16.msra.mxu0 %v532_v3  ;;  %512 = vmatprep.subr.mxu1 %v604_v8  ;;  %vm111_vm2 = vcmask 64512   ;;  %s607_s0 = smov 112   ;;  %s608_s24 = smov [#allocation4]  }
   0x6   :  { %537 = vmatprep.subr.bf16.mxu0 %v536_v6  ;;  %514 = vmatprep.mubr.msk.f32.mxu1 %vm605_vm1, %v604_v8  ;;  %v104_v14 = vshrl.u32 %v103_v13, 7  ;;  %v106_v15 = vand.u32 127, %v103_v13  ;;  %s464_s25 = sshll.u32 %s608_s24, 4  ;;  %s465_s25 = int_to_ptr.vmem [resolvable:$true] %s464_s25 }
   0x7   :  { %s556_s26 = scalar_lea.vmem %s465_s25, 256  ;;  %p561_p1 = scmp.lt.s32.totalorder %s465_s25, %s465_s25 }
   0x8   :  { %vm107_vm3 = vcmp.le.s32.totalorder %v106_v15, %v104_v14  ;;  %p557_p0 = scmp.ne.s32.totalorder %s465_s25, %s556_s26  ;;  %p562_p2 = scmp.lt.s32.totalorder %s556_s26, %s556_s26 }
   0x9   :  { %539 = vmatpush3.bf16.msra.mxu0 %v536_v6 }
   0xa   :  { %522 = vmatprep.subr.mxu0 %v604_v8  ;;  %p563_p3 = por %p562_p2, %p561_p1 }
   0xc   :  { %510 = vmatmul.mubr.msk.f32.vlgmr.msra.gmra.mrb[0].mxu0 %vm21_vm0, %v16_v7  ;;  %p564_p4 = pnand %p563_p3, %p557_p0 }
   0xd   :  { %524 = vmatprep.mubr.msk.f32.mxu0 %vm605_vm1, %v604_v8 }
  0xdf   :  { %v511_v9 = vpop.f32.mrb[0].mxu0 }
  0xe0   :  { %v94_v10 = vpop.f32.mrb[1].mxu0 }
  0xe1   :  { %109 = vrot.lane.b32.xlu0 %v94_v10, %s606_s1 }
  0xe5   :  { %187 = vrot.lane.b32.xlu0 %v511_v9, %s606_s1 }
 0x153   :  { %v110_v11 = vpop.permute.xlu0 %109 }
 0x154   :  { %513 = vmatpush3.xpose.msk.msra.mxu1 %vm111_vm2, %v110_v11 }
 0x155   :  { %517 = vmatprep.subr.mxu1 %v604_v8 }
 0x157   :  { %515 = vmatmul.mubr.msk.f32.vlgmr.msra.gmra.mrb[0].mxu1 %vm111_vm2, %v94_v10  ;;  %v188_v12 = vpop.permute.xlu0 %187 }
 0x158   :  { %518 = vmatpush3.xpose.msk.msra.mxu1 %vm111_vm2, %v188_v12  ;;  %519 = vmatprep.mubr.msk.f32.mxu1 %vm605_vm1, %v604_v8 }
 0x159   :  { %527 = vmatprep.subr.mxu1 %v604_v8 }
 0x15b   :  { %520 = vmatmul.mubr.msk.f32.vlgmr.msra.gmra.mrb[2].mxu1 %vm111_vm2, %v511_v9 }
 0x15c   :  { %529 = vmatprep.mubr.msk.f32.mxu1 %vm605_vm1, %v604_v8 }
 0x22a   :  { %v182_v16 = vpop.f32.mrb[0].mxu1 }
 0x22b   :  { %v263_v17 = vmul.f32 0.35355338, %v182_v16  ;;  %v516_v18 = vpop.f32.mrb[1].mxu1 }
 0x22d   :  { %v267_v19 = vsel %vm107_vm3, %v263_v17, -1e+30 }
 0x22e   :  { %v259_v20 = vpop.f32.mrb[2].mxu1  ;;  %v269_v21 = vsel %vm111_vm2, %v267_v19, -inf }
 0x22f   :  { %v264_v22 = vmul.f32 0.35355338, %v259_v20  ;;  %270 = vmax.xlane.f32.xlu1 %v269_v21  ;;  %v521_v23 = vpop.f32.mrb[3].mxu1 }
 0x231   :  { %v268_v24 = vsel %vm107_vm3, %v264_v22, -1e+30 }
 0x232   :  { %v272_v25 = vsel %vm111_vm2, %v268_v24, -inf }
 0x233   :  { %273 = vmax.xlane.f32.xlu1 %v272_v25 }
 0x244   :  { %291 = vrot.lane.b32.xlu1 %v94_v10, %s607_s0 }
 0x2bc   :  { %v271_v26 = vpop.xlane.xlu1 %270 }
 0x2bd   :  { %v275_v27 = vsub.f32 %v267_v19, %v271_v26 }
 0x2bf   :  { %v277_v28 = vmul.f32 1.442695, %v275_v27 }
 0x2c0   :  { %v274_v29 = vpop.xlane.xlu1 %273 }
 0x2c1   :  { %548 = vpow2.f32 %v277_v28  ;;  %v276_v30 = vsub.f32 %v268_v24, %v274_v29 }
 0x2c3   :  { %v279_v31 = vmul.f32 1.442695, %v276_v30 }
 0x2c4   :  { %v292_v32 = vpop.permute.xlu1 %291 }
 0x2c5   :  { %550 = vpow2.f32 %v279_v31  ;;  %523 = vmatpush3.msra.mxu0 %v292_v32 }
 0x2cb   :  { %v549_v33 = vpop.eup %548 }
 0x2cc   :  { %v281_v34 = vsel %vm111_vm2, %v549_v33, 0.0 }
 0x2cd   :  { %282 = vadd.xlane.f32.xlu0 %v281_v34 }
 0x2cf   :  { %v551_v35 = vpop.eup %550 }
 0x2d0   :  { %v284_v36 = vsel %vm111_vm2, %v551_v35, 0.0 }
 0x2d1   :  { %285 = vadd.xlane.f32.xlu1 %v284_v36 }
 0x2e2   :  { %367 = vrot.lane.b32.xlu1 %v511_v9, %s607_s0 }
 0x35a   :  { %v283_v37 = vpop.xlane.xlu0 %282 }
 0x35b   :  { %552 = vrcp.f32 %v283_v37 }
 0x35e   :  { %v286_v38 = vpop.xlane.xlu1 %285 }
 0x35f   :  { %554 = vrcp.f32 %v286_v38 }
 0x362   :  { %v368_v39 = vpop.permute.xlu1 %367 }
 0x363   :  { %528 = vmatpush3.msra.mxu1 %v368_v39 }
 0x365   :  { %v553_v40 = vpop.eup %552 }
 0x366   :  { %v288_v41 = vmul.f32 %v553_v40, %v549_v33 }
 0x368   :  { %445 = vst.msk [vmem:[#allocation4] sm:$0xff] %vm111_vm2, %v288_v41  ;;  %525 = vmatmul.mubr.msk.f32.vlgmr.msra.gmra.mrb[2].mxu0 %vm111_vm2, %v288_v41 }
 0x369   :  { %v555_v42 = vpop.eup %554 }
 0x36a   :  { %v290_v43 = vmul.f32 %v555_v42, %v551_v35 }
 0x36c   :  { %446 = vst.msk [vmem:[#allocation4 + $0x8] sm:$0xff] %vm111_vm2, %v290_v43  ;;  %530 = vmatmul.mubr.msk.f32.vlgmr.msra.gmra.mrb[4].mxu1 %vm111_vm2, %v290_v43 }
 0x36d   :  { %567 = shalt.err (!%p564_p4)
}
 0x36e   :  { %s568_s29 = scalar_lea.hbm %s695_s3, 256 }
 0x36f   :  { %p569_p5 = scmp.ne.s32.totalorder %s695_s3, %s568_s29  ;;  %p572_p6 = scmp.lt.u32.totalorder %s568_s29, %s695_s3 }
 0x371   :  { %p574_p7 = pnand %p572_p6, %p569_p5 }
 0x373   :  { %577 = shalt.err (!%p574_p7)
}
 0x374   :  { %s609_s7 = smov 128   ;;  %s610_s8 = smov 8  }
 0x375   :  { %470 = dma.vmem_to_hbm [thread:$0]  %s465_s25, 256, %s695_s3, [#allocation5], %s609_s7, %s609_s7, %s610_s8  }
 0x376   :  { %s611_s11 = smov [#allocation2]  }
 0x377   :  { %s452_s12 = sshll.u32 %s611_s11, 4  ;;  %s453_s12 = int_to_ptr.vmem [resolvable:$true] %s452_s12 }
 0x378   :  { %s578_s13 = scalar_lea.vmem %s453_s12, 256  ;;  %p583_p9 = scmp.lt.s32.totalorder %s453_s12, %s453_s12 }
 0x379   :  { %p579_p8 = scmp.ne.s32.totalorder %s453_s12, %s578_s13  ;;  %p584_p10 = scmp.lt.s32.totalorder %s578_s13, %s578_s13 }
 0x37b   :  { %p585_p11 = por %p584_p10, %p583_p9 }
 0x37d   :  { %p586_p12 = pnand %p585_p11, %p579_p8 }
 0x43b   :  { %v363_v44 = vpop.f32.mrb[2].mxu0 }
 0x43c   :  { %443 = vst.msk [vmem:[#allocation2] sm:$0xff] %vm111_vm2, %v363_v44  ;;  %v526_v45 = vpop.f32.mrb[3].mxu0 }
 0x43f   :  { %v439_v46 = vpop.f32.mrb[4].mxu1 }
 0x440   :  { %444 = vst.msk [vmem:[#allocation2 + $0x8] sm:$0xff] %vm111_vm2, %v439_v46  ;;  %v531_v47 = vpop.f32.mrb[5].mxu1 }
 0x441   :  { %589 = shalt.err (!%p586_p12)
}
 0x442   :  { %s590_s15 = scalar_lea.hbm %s694_s2, 256 }
 0x443   :  { %p591_p13 = scmp.ne.s32.totalorder %s694_s2, %s590_s15  ;;  %p594_p0 = scmp.lt.u32.totalorder %s590_s15, %s694_s2 }
 0x445   :  { %p596_p1 = pnand %p594_p0, %p591_p13 }
 0x447   :  { %599 = shalt.err (!%p596_p1)
}
 0x448   :  { %458 = dma.vmem_to_hbm [thread:$0]  %s453_s12, 256, %s694_s2, [#allocation3], %s609_s7, %s609_s7, %s610_s8  }
 0x449   :  { %600 = dma.done.wait [#allocation3], 256  }
 0x44a   :  { %601 = vsyncadd [#allocation3], 4294967040 }
 0x44b   :  { %602 = dma.done.wait [#allocation5], 256  }
 0x44c   :  { %603 = vsyncadd [#allocation5], 4294967040 }
 0x44d   :  { %477 = vsyncpa [#allocation3], 1 }
 0x44e   :  { %478 = vsyncpa [#allocation5], 1 }

</bundles_post_ra>
